<compile_context>
chip_gen: v7x
topology: tpu7x:2x2x1
jax: 0.10.0
libtpu: 0.0.40
codegen_flags: <defaults>
</compile_context>

<pallas_src>
import functools

import jax
import jax.numpy as jnp
from jax.experimental import pallas as pl
from jax.experimental.pallas import tpu as pltpu

LATENT_DIM = 8
IN_DIM = 28 * 28   # 784
H_PAD = 128        # lane-dense slab width for hidden / latent dims
ENC_DIMS = [IN_DIM, 128, 64, 12, LATENT_DIM]
DEC_DIMS = [LATENT_DIM, 12, 64, 128, IN_DIM]


def _round_up(n, m):
    return ((n + m - 1) // m) * m


def _cdiv(a, b):
    return (a + b - 1) // b


def _pad_w(w, rows, cols):
    """Zero-pad a (in,out) weight to (rows, cols) and cast to bf16."""
    return jnp.pad(w, ((0, rows - w.shape[0]), (0, cols - w.shape[1]))
                   ).astype(jnp.bfloat16)


def _pad_b(b, cols):
    """Zero-pad a bias to cols lanes, keep f32, shape (1, cols)."""
    return jnp.pad(b, ((0, cols - b.shape[0]),)).reshape(1, cols).astype(jnp.float32)


def _autoencoder_kernel(x_ref,
                        ew0, eb0, ew1, eb1, ew2, eb2, ew3, eb3,
                        dw0, db0, dw1, db1, dw2, db2, dw3, db3,
                        out_ref, z_ref):
    """One batch tile through all 8 layers (matmul + bias + ReLU)."""
    # ----- encoder -----
    h = jnp.dot(x_ref[...].astype(jnp.bfloat16), ew0[...],
                preferred_element_type=jnp.float32) + eb0[...]
    h = jnp.maximum(h, 0.0).astype(jnp.bfloat16)
    h = jnp.dot(h, ew1[...], preferred_element_type=jnp.float32) + eb1[...]
    h = jnp.maximum(h, 0.0).astype(jnp.bfloat16)
    h = jnp.dot(h, ew2[...], preferred_element_type=jnp.float32) + eb2[...]
    h = jnp.maximum(h, 0.0).astype(jnp.bfloat16)
    # ew3/eb3 are zero-padded to H_PAD lanes -> z lanes [latent:] are exactly 0.
    z = jnp.dot(h, ew3[...], preferred_element_type=jnp.float32) + eb3[...]
    z_ref[...] = z  # lane-dense (TILE, 128) f32 store; no ReLU on z.

    # ----- decoder (consumes z.float(), matching forward()) -----
    # dw0 is zero-padded along rows, so the padded z lanes contribute nothing.
    h = jnp.dot(z.astype(jnp.bfloat16), dw0[...],
                preferred_element_type=jnp.float32) + db0[...]
    h = jnp.maximum(h, 0.0).astype(jnp.bfloat16)
    h = jnp.dot(h, dw1[...], preferred_element_type=jnp.float32) + db1[...]
    h = jnp.maximum(h, 0.0).astype(jnp.bfloat16)
    h = jnp.dot(h, dw2[...], preferred_element_type=jnp.float32) + db2[...]
    h = jnp.maximum(h, 0.0).astype(jnp.bfloat16)
    out = jnp.dot(h, dw3[...], preferred_element_type=jnp.float32) + db3[...]
    out_ref[...] = out  # no ReLU on the last decoder layer


@functools.partial(jax.jit, static_argnames=("latent_dim", "tile_b"))
def autoencoder_forward(x, params, *, latent_dim=LATENT_DIM, tile_b=1024):
    """Returns (output, latent_rep), mirroring ForwardOutput."""
    batch = x.shape[0]

    # Degenerate batch: nothing to do.
    if batch == 0:
        return (jnp.zeros((0, IN_DIM), jnp.float32),
                jnp.zeros((0, latent_dim), jnp.float32))

    # --- tile / grid selection -------------------------------------------
    # * tile is a multiple of 8 (sublanes) and <= tile_b.
    # * padding is at most a few rows (tile chosen from cdiv, not round-up-to-
    #   tile_b), avoiding wasted HBM traffic for non-divisible batches.
    # * when the batch is big enough, force >= 2 grid steps so both v7x
    #   TensorCores get work via dimension_semantics=("parallel",).
    padded8 = _round_up(batch, 8)
    n_steps = _cdiv(padded8, tile_b)
    if padded8 >= 16 and n_steps < 2:
        n_steps = 2
    tile = _round_up(_cdiv(padded8, n_steps), 8)
    padded_b = tile * n_steps

    if padded_b != batch:
        x = jnp.pad(x, ((0, padded_b - batch), (0, 0)))

    (ew0, eb0), (ew1, eb1), (ew2, eb2), (ew3, eb3) = params["encoder"]
    (dw0, db0), (dw1, db1), (dw2, db2), (dw3, db3) = params["decoder"]

    # --- lane-dense parameter padding (one-time, numerically identical) ---
    # Every hidden / latent dim (12, 64, 8) is padded to 128 lanes with zero
    # weights / biases; ReLU(0)=0 and the zero rows of the following weight
    # kill any contribution from padded lanes.
    flat_params = [
        ew0.astype(jnp.bfloat16),        _pad_b(eb0, 128),     # 784 -> 128
        _pad_w(ew1, 128, H_PAD),         _pad_b(eb1, H_PAD),   # 128 -> 64(->128)
        _pad_w(ew2, H_PAD, H_PAD),       _pad_b(eb2, H_PAD),   # 64  -> 12(->128)
        _pad_w(ew3, H_PAD, H_PAD),       _pad_b(eb3, H_PAD),   # 12  -> z (->128)
        _pad_w(dw0, H_PAD, H_PAD),       _pad_b(db0, H_PAD),   # z   -> 12(->128)
        _pad_w(dw1, H_PAD, H_PAD),       _pad_b(db1, H_PAD),   # 12  -> 64(->128)
        _pad_w(dw2, H_PAD, H_PAD),       _pad_b(db2, H_PAD),   # 64  -> 128
        dw3.astype(jnp.bfloat16),        _pad_b(db3, IN_DIM),  # 128 -> 784
    ]

    grid = (n_steps,)

    in_specs = [pl.BlockSpec((tile, IN_DIM), lambda i: (i, 0))]
    # Weights / biases: whole-array blocks, constant index_map -> VMEM-resident
    # (DMA'd once, never re-fetched across grid steps).
    in_specs += [pl.BlockSpec(p.shape, lambda i: (0, 0)) for p in flat_params]

    out_specs = (
        pl.BlockSpec((tile, IN_DIM), lambda i: (i, 0)),
        pl.BlockSpec((tile, H_PAD), lambda i: (i, 0)),
    )

    flops_per_row = 2 * sum(
        di * do for di, do in zip(ENC_DIMS[:-1] + DEC_DIMS[:-1],
                                  ENC_DIMS[1:] + DEC_DIMS[1:]))
    param_bytes = sum(int(p.size) * p.dtype.itemsize for p in flat_params)
    cost = pl.CostEstimate(
        flops=flops_per_row * padded_b,
        transcendentals=0,
        bytes_accessed=padded_b * (IN_DIM * 4 + IN_DIM * 4 + H_PAD * 4)
        + param_bytes,
    )

    out, z_slab = pl.pallas_call(
        _autoencoder_kernel,
        grid=grid,
        out_shape=(
            jax.ShapeDtypeStruct((padded_b, IN_DIM), jnp.float32),
            jax.ShapeDtypeStruct((padded_b, H_PAD), jnp.float32),
        ),
        in_specs=in_specs,
        out_specs=out_specs,
        compiler_params=pltpu.CompilerParams(
            dimension_semantics=("parallel",),
            # Explicit budget: legal on v5e/v6e (128 MiB physical) and v7x
            # (64 MiB physical) and large enough for tile=1024 double-buffered
            # x/out/z (~15 MB) plus weights.
            vmem_limit_bytes=48 * 1024 * 1024,
        ),
        cost_estimate=cost,
    )(x, *flat_params)

    if padded_b != batch:
        out = out[:batch]
        z_slab = z_slab[:batch]
    return out, z_slab[:, :latent_dim]


def init_params(key):
    """Deterministic init matching nn.Linear shapes (weights stored (in,out))."""
    def linear(key, fan_in, fan_out):
        kw, kb = jax.random.split(key)
        bound = 1.0 / jnp.sqrt(fan_in)
        w = jax.random.uniform(kw, (fan_in, fan_out), jnp.float32, -bound, bound)
        b = jax.random.uniform(kb, (fan_out,), jnp.float32, -bound, bound)
        return w, b

    keys = jax.random.split(key, 8)
    enc = [linear(keys[i], ENC_DIMS[i], ENC_DIMS[i + 1]) for i in range(4)]
    dec = [linear(keys[4 + i], DEC_DIMS[i], DEC_DIMS[i + 1]) for i in range(4)]
    return {"encoder": enc, "decoder": dec}


def reference_forward(x, params):
    """Pure-JAX f32 reference for validation."""
    h = x
    for i, (w, b) in enumerate(params["encoder"]):
        h = h @ w + b
        if i < 3:
            h = jnp.maximum(h, 0.0)
    z = h
    h = z
    for i, (w, b) in enumerate(params["decoder"]):
        h = h @ w + b
        if i < 3:
            h = jnp.maximum(h, 0.0)
    return h, z


if __name__ == "__main__":
    key = jax.random.PRNGKey(0)
    k_params, k_x1, k_x2 = jax.random.split(key, 3)

    params = init_params(k_params)

    # Small demo batch (single tile, grid=1).
    batch = 2
    x = jax.random.normal(k_x1, (batch, IN_DIM), jnp.float32)
    out, z = autoencoder_forward(x, params)
    jax.block_until_ready((out, z))
    ref_out, ref_z = reference_forward(x, params)
    assert out.shape == (batch, IN_DIM) and z.shape == (batch, LATENT_DIM)
    # bf16 matmul operands (f32 accumulation) -> loosened tolerance vs f32 ref.
    assert jnp.allclose(out, ref_out, atol=5e-2, rtol=5e-2)
    assert jnp.allclose(z, ref_z, atol=5e-2, rtol=5e-2)

    # Non-divisible batch: exercises the multi-step grid (2 tiles of 152 rows,
    # only 4 padded rows) and the slice-back path.
    batch2 = 300
    x2 = jax.random.normal(k_x2, (batch2, IN_DIM), jnp.float32)
    out2, z2 = autoencoder_forward(x2, params)
    jax.block_until_ready((out2, z2))
    ref_out2, ref_z2 = reference_forward(x2, params)
    assert out2.shape == (batch2, IN_DIM) and z2.shape == (batch2, LATENT_DIM)
    assert jnp.allclose(out2, ref_out2, atol=5e-2, rtol=5e-2)
    assert jnp.allclose(z2, ref_z2, atol=5e-2, rtol=5e-2)

    print("KERNEL_OK")
</pallas_src>

<mosaic_0001>
module attributes {stable_mosaic.version = 11 : i64} {
  func.func @_autoencoder_kernel(%arg0: i32, %arg1: memref<8x784xf32, #tpu.memory_space<vmem>>, %arg2: memref<784x128xbf16, #tpu.memory_space<vmem>>, %arg3: memref<1x128xf32, #tpu.memory_space<vmem>>, %arg4: memref<128x128xbf16, #tpu.memory_space<vmem>>, %arg5: memref<1x128xf32, #tpu.memory_space<vmem>>, %arg6: memref<128x128xbf16, #tpu.memory_space<vmem>>, %arg7: memref<1x128xf32, #tpu.memory_space<vmem>>, %arg8: memref<128x128xbf16, #tpu.memory_space<vmem>>, %arg9: memref<1x128xf32, #tpu.memory_space<vmem>>, %arg10: memref<128x128xbf16, #tpu.memory_space<vmem>>, %arg11: memref<1x128xf32, #tpu.memory_space<vmem>>, %arg12: memref<128x128xbf16, #tpu.memory_space<vmem>>, %arg13: memref<1x128xf32, #tpu.memory_space<vmem>>, %arg14: memref<128x128xbf16, #tpu.memory_space<vmem>>, %arg15: memref<1x128xf32, #tpu.memory_space<vmem>>, %arg16: memref<128x784xbf16, #tpu.memory_space<vmem>>, %arg17: memref<1x784xf32, #tpu.memory_space<vmem>>, %arg18: memref<8x784xf32, #tpu.memory_space<vmem>>, %arg19: memref<8x128xf32, #tpu.memory_space<vmem>>) attributes {dimension_semantics = [#tpu.dimension_semantics<parallel>], iteration_bounds = array<i64: 1>, scalar_prefetch = 0 : i64, scratch_operands = 0 : i64, tpu.core_type = #tpu.core_type<tc>, window_params = [{transform_indices = @transform_0, window_bounds = array<i64: 8, 784>}, {pipeline_mode = #tpu.pipeline_mode<synchronous>, transform_indices = @transform_1, window_bounds = array<i64: 784, 128>}, {pipeline_mode = #tpu.pipeline_mode<synchronous>, transform_indices = @transform_2, window_bounds = array<i64: 1, 128>}, {pipeline_mode = #tpu.pipeline_mode<synchronous>, transform_indices = @transform_3, window_bounds = array<i64: 128, 128>}, {pipeline_mode = #tpu.pipeline_mode<synchronous>, transform_indices = @transform_4, window_bounds = array<i64: 1, 128>}, {pipeline_mode = #tpu.pipeline_mode<synchronous>, transform_indices = @transform_5, window_bounds = array<i64: 128, 128>}, {pipeline_mode = #tpu.pipeline_mode<synchronous>, transform_indices = @transform_6, window_bounds = array<i64: 1, 128>}, {pipeline_mode = #tpu.pipeline_mode<synchronous>, transform_indices = @transform_7, window_bounds = array<i64: 128, 128>}, {pipeline_mode = #tpu.pipeline_mode<synchronous>, transform_indices = @transform_8, window_bounds = array<i64: 1, 128>}, {pipeline_mode = #tpu.pipeline_mode<synchronous>, transform_indices = @transform_9, window_bounds = array<i64: 128, 128>}, {pipeline_mode = #tpu.pipeline_mode<synchronous>, transform_indices = @transform_10, window_bounds = array<i64: 1, 128>}, {pipeline_mode = #tpu.pipeline_mode<synchronous>, transform_indices = @transform_11, window_bounds = array<i64: 128, 128>}, {pipeline_mode = #tpu.pipeline_mode<synchronous>, transform_indices = @transform_12, window_bounds = array<i64: 1, 128>}, {pipeline_mode = #tpu.pipeline_mode<synchronous>, transform_indices = @transform_13, window_bounds = array<i64: 128, 128>}, {pipeline_mode = #tpu.pipeline_mode<synchronous>, transform_indices = @transform_14, window_bounds = array<i64: 1, 128>}, {pipeline_mode = #tpu.pipeline_mode<synchronous>, transform_indices = @transform_15, window_bounds = array<i64: 128, 784>}, {pipeline_mode = #tpu.pipeline_mode<synchronous>, transform_indices = @transform_16, window_bounds = array<i64: 1, 784>}, {transform_indices = @transform_17, window_bounds = array<i64: 8, 784>}, {transform_indices = @transform_18, window_bounds = array<i64: 8, 128>}]} {
    %c0 = arith.constant 0 : index
    %c0_0 = arith.constant 0 : index
    %0 = vector.load %arg1[%c0, %c0_0] : memref<8x784xf32, #tpu.memory_space<vmem>>, vector<8x784xf32>
    %1 = arith.truncf %0 : vector<8x784xf32> to vector<8x784xbf16>
    %c0_1 = arith.constant 0 : index
    %c0_2 = arith.constant 0 : index
    %2 = vector.load %arg2[%c0_1, %c0_2] : memref<784x128xbf16, #tpu.memory_space<vmem>>, vector<784x128xbf16>
    %cst = arith.constant dense<0.000000e+00> : vector<8x128xf32>
    %3 = tpu.matmul %1, %2, %cst {dimension_numbers = #tpu.dot_dimension_numbers<[1], [0], [0], [1], [0, 0, 1, 1], [], []>} : vector<8x784xbf16>, vector<784x128xbf16>, vector<8x128xf32> -> vector<8x128xf32>
    %c0_3 = arith.constant 0 : index
    %c0_4 = arith.constant 0 : index
    %4 = vector.load %arg3[%c0_3, %c0_4] : memref<1x128xf32, #tpu.memory_space<vmem>>, vector<1x128xf32>
    %5 = vector.broadcast %4 : vector<1x128xf32> to vector<8x128xf32>
    %6 = arith.addf %3, %5 : vector<8x128xf32>
    %cst_5 = arith.constant 0.000000e+00 : f32
    %7 = vector.broadcast %cst_5 : f32 to vector<8x128xf32>
    %8 = arith.maximumf %6, %7 : vector<8x128xf32>
    %9 = arith.truncf %8 : vector<8x128xf32> to vector<8x128xbf16>
    %c0_6 = arith.constant 0 : index
    %c0_7 = arith.constant 0 : index
    %10 = vector.load %arg4[%c0_6, %c0_7] : memref<128x128xbf16, #tpu.memory_space<vmem>>, vector<128x128xbf16>
    %cst_8 = arith.constant dense<0.000000e+00> : vector<8x128xf32>
    %11 = tpu.matmul %9, %10, %cst_8 {dimension_numbers = #tpu.dot_dimension_numbers<[1], [0], [0], [1], [0, 0, 1, 1], [], []>} : vector<8x128xbf16>, vector<128x128xbf16>, vector<8x128xf32> -> vector<8x128xf32>
    %c0_9 = arith.constant 0 : index
    %c0_10 = arith.constant 0 : index
    %12 = vector.load %arg5[%c0_9, %c0_10] : memref<1x128xf32, #tpu.memory_space<vmem>>, vector<1x128xf32>
    %13 = vector.broadcast %12 : vector<1x128xf32> to vector<8x128xf32>
    %14 = arith.addf %11, %13 : vector<8x128xf32>
    %cst_11 = arith.constant 0.000000e+00 : f32
    %15 = vector.broadcast %cst_11 : f32 to vector<8x128xf32>
    %16 = arith.maximumf %14, %15 : vector<8x128xf32>
    %17 = arith.truncf %16 : vector<8x128xf32> to vector<8x128xbf16>
    %c0_12 = arith.constant 0 : index
    %c0_13 = arith.constant 0 : index
    %18 = vector.load %arg6[%c0_12, %c0_13] : memref<128x128xbf16, #tpu.memory_space<vmem>>, vector<128x128xbf16>
    %cst_14 = arith.constant dense<0.000000e+00> : vector<8x128xf32>
    %19 = tpu.matmul %17, %18, %cst_14 {dimension_numbers = #tpu.dot_dimension_numbers<[1], [0], [0], [1], [0, 0, 1, 1], [], []>} : vector<8x128xbf16>, vector<128x128xbf16>, vector<8x128xf32> -> vector<8x128xf32>
    %c0_15 = arith.constant 0 : index
    %c0_16 = arith.constant 0 : index
    %20 = vector.load %arg7[%c0_15, %c0_16] : memref<1x128xf32, #tpu.memory_space<vmem>>, vector<1x128xf32>
    %21 = vector.broadcast %20 : vector<1x128xf32> to vector<8x128xf32>
    %22 = arith.addf %19, %21 : vector<8x128xf32>
    %cst_17 = arith.constant 0.000000e+00 : f32
    %23 = vector.broadcast %cst_17 : f32 to vector<8x128xf32>
    %24 = arith.maximumf %22, %23 : vector<8x128xf32>
    %25 = arith.truncf %24 : vector<8x128xf32> to vector<8x128xbf16>
    %c0_18 = arith.constant 0 : index
    %c0_19 = arith.constant 0 : index
    %26 = vector.load %arg8[%c0_18, %c0_19] : memref<128x128xbf16, #tpu.memory_space<vmem>>, vector<128x128xbf16>
    %cst_20 = arith.constant dense<0.000000e+00> : vector<8x128xf32>
    %27 = tpu.matmul %25, %26, %cst_20 {dimension_numbers = #tpu.dot_dimension_numbers<[1], [0], [0], [1], [0, 0, 1, 1], [], []>} : vector<8x128xbf16>, vector<128x128xbf16>, vector<8x128xf32> -> vector<8x128xf32>
    %c0_21 = arith.constant 0 : index
    %c0_22 = arith.constant 0 : index
    %28 = vector.load %arg9[%c0_21, %c0_22] : memref<1x128xf32, #tpu.memory_space<vmem>>, vector<1x128xf32>
    %29 = vector.broadcast %28 : vector<1x128xf32> to vector<8x128xf32>
    %30 = arith.addf %27, %29 : vector<8x128xf32>
    %c0_23 = arith.constant 0 : index
    %c0_24 = arith.constant 0 : index
    %31 = vector.load %arg19[%c0_23, %c0_24] : memref<8x128xf32, #tpu.memory_space<vmem>>, vector<8x128xf32>
    tpu.vector_store %arg19[%c0_23, %c0_24], %30 {strides = array<i32>} : memref<8x128xf32, #tpu.memory_space<vmem>>, vector<8x128xf32>,
    %32 = arith.truncf %30 : vector<8x128xf32> to vector<8x128xbf16>
    %c0_25 = arith.constant 0 : index
    %c0_26 = arith.constant 0 : index
    %33 = vector.load %arg10[%c0_25, %c0_26] : memref<128x128xbf16, #tpu.memory_space<vmem>>, vector<128x128xbf16>
    %cst_27 = arith.constant dense<0.000000e+00> : vector<8x128xf32>
    %34 = tpu.matmul %32, %33, %cst_27 {dimension_numbers = #tpu.dot_dimension_numbers<[1], [0], [0], [1], [0, 0, 1, 1], [], []>} : vector<8x128xbf16>, vector<128x128xbf16>, vector<8x128xf32> -> vector<8x128xf32>
    %c0_28 = arith.constant 0 : index
    %c0_29 = arith.constant 0 : index
    %35 = vector.load %arg11[%c0_28, %c0_29] : memref<1x128xf32, #tpu.memory_space<vmem>>, vector<1x128xf32>
    %36 = vector.broadcast %35 : vector<1x128xf32> to vector<8x128xf32>
    %37 = arith.addf %34, %36 : vector<8x128xf32>
    %cst_30 = arith.constant 0.000000e+00 : f32
    %38 = vector.broadcast %cst_30 : f32 to vector<8x128xf32>
    %39 = arith.maximumf %37, %38 : vector<8x128xf32>
    %40 = arith.truncf %39 : vector<8x128xf32> to vector<8x128xbf16>
    %c0_31 = arith.constant 0 : index
    %c0_32 = arith.constant 0 : index
    %41 = vector.load %arg12[%c0_31, %c0_32] : memref<128x128xbf16, #tpu.memory_space<vmem>>, vector<128x128xbf16>
    %cst_33 = arith.constant dense<0.000000e+00> : vector<8x128xf32>
    %42 = tpu.matmul %40, %41, %cst_33 {dimension_numbers = #tpu.dot_dimension_numbers<[1], [0], [0], [1], [0, 0, 1, 1], [], []>} : vector<8x128xbf16>, vector<128x128xbf16>, vector<8x128xf32> -> vector<8x128xf32>
    %c0_34 = arith.constant 0 : index
    %c0_35 = arith.constant 0 : index
    %43 = vector.load %arg13[%c0_34, %c0_35] : memref<1x128xf32, #tpu.memory_space<vmem>>, vector<1x128xf32>
    %44 = vector.broadcast %43 : vector<1x128xf32> to vector<8x128xf32>
    %45 = arith.addf %42, %44 : vector<8x128xf32>
    %cst_36 = arith.constant 0.000000e+00 : f32
    %46 = vector.broadcast %cst_36 : f32 to vector<8x128xf32>
    %47 = arith.maximumf %45, %46 : vector<8x128xf32>
    %48 = arith.truncf %47 : vector<8x128xf32> to vector<8x128xbf16>
    %c0_37 = arith.constant 0 : index
    %c0_38 = arith.constant 0 : index
    %49 = vector.load %arg14[%c0_37, %c0_38] : memref<128x128xbf16, #tpu.memory_space<vmem>>, vector<128x128xbf16>
    %cst_39 = arith.constant dense<0.000000e+00> : vector<8x128xf32>
    %50 = tpu.matmul %48, %49, %cst_39 {dimension_numbers = #tpu.dot_dimension_numbers<[1], [0], [0], [1], [0, 0, 1, 1], [], []>} : vector<8x128xbf16>, vector<128x128xbf16>, vector<8x128xf32> -> vector<8x128xf32>
    %c0_40 = arith.constant 0 : index
    %c0_41 = arith.constant 0 : index
    %51 = vector.load %arg15[%c0_40, %c0_41] : memref<1x128xf32, #tpu.memory_space<vmem>>, vector<1x128xf32>
    %52 = vector.broadcast %51 : vector<1x128xf32> to vector<8x128xf32>
    %53 = arith.addf %50, %52 : vector<8x128xf32>
    %cst_42 = arith.constant 0.000000e+00 : f32
    %54 = vector.broadcast %cst_42 : f32 to vector<8x128xf32>
    %55 = arith.maximumf %53, %54 : vector<8x128xf32>
    %56 = arith.truncf %55 : vector<8x128xf32> to vector<8x128xbf16>
    %c0_43 = arith.constant 0 : index
    %c0_44 = arith.constant 0 : index
    %57 = vector.load %arg16[%c0_43, %c0_44] : memref<128x784xbf16, #tpu.memory_space<vmem>>, vector<128x784xbf16>
    %cst_45 = arith.constant dense<0.000000e+00> : vector<8x784xf32>
    %58 = tpu.matmul %56, %57, %cst_45 {dimension_numbers = #tpu.dot_dimension_numbers<[1], [0], [0], [1], [0, 0, 1, 1], [], []>} : vector<8x128xbf16>, vector<128x784xbf16>, vector<8x784xf32> -> vector<8x784xf32>
    %c0_46 = arith.constant 0 : index
    %c0_47 = arith.constant 0 : index
    %59 = vector.load %arg17[%c0_46, %c0_47] : memref<1x784xf32, #tpu.memory_space<vmem>>, vector<1x784xf32>
    %60 = vector.broadcast %59 : vector<1x784xf32> to vector<8x784xf32>
    %61 = arith.addf %58, %60 : vector<8x784xf32>
    %c0_48 = arith.constant 0 : index
    %c0_49 = arith.constant 0 : index
    %62 = vector.load %arg18[%c0_48, %c0_49] : memref<8x784xf32, #tpu.memory_space<vmem>>, vector<8x784xf32>
    tpu.vector_store %arg18[%c0_48, %c0_49], %61 {strides = array<i32>} : memref<8x784xf32, #tpu.memory_space<vmem>>, vector<8x784xf32>,
    return
  }
  func.func @transform_0(%arg0: i32) -> (i32, i32) {
    %c0_i32 = arith.constant 0 : i32
    %c0_i32_0 = arith.constant 0 : i32
    return %arg0, %c0_i32 : i32, i32
  }
  func.func @transform_1(%arg0: i32) -> (i32, i32) {
    %c0_i32 = arith.constant 0 : i32
    %c0_i32_0 = arith.constant 0 : i32
    %c0_i32_1 = arith.constant 0 : i32
    return %c0_i32, %c0_i32_0 : i32, i32
  }
  func.func @transform_2(%arg0: i32) -> (i32, i32) {
    %c0_i32 = arith.constant 0 : i32
    %c0_i32_0 = arith.constant 0 : i32
    %c0_i32_1 = arith.constant 0 : i32
    return %c0_i32, %c0_i32_0 : i32, i32
  }
  func.func @transform_3(%arg0: i32) -> (i32, i32) {
    %c0_i32 = arith.constant 0 : i32
    %c0_i32_0 = arith.constant 0 : i32
    %c0_i32_1 = arith.constant 0 : i32
    return %c0_i32, %c0_i32_0 : i32, i32
  }
  func.func @transform_4(%arg0: i32) -> (i32, i32) {
    %c0_i32 = arith.constant 0 : i32
    %c0_i32_0 = arith.constant 0 : i32
    %c0_i32_1 = arith.constant 0 : i32
    return %c0_i32, %c0_i32_0 : i32, i32
  }
  func.func @transform_5(%arg0: i32) -> (i32, i32) {
    %c0_i32 = arith.constant 0 : i32
    %c0_i32_0 = arith.constant 0 : i32
    %c0_i32_1 = arith.constant 0 : i32
    return %c0_i32, %c0_i32_0 : i32, i32
  }
  func.func @transform_6(%arg0: i32) -> (i32, i32) {
    %c0_i32 = arith.constant 0 : i32
    %c0_i32_0 = arith.constant 0 : i32
    %c0_i32_1 = arith.constant 0 : i32
    return %c0_i32, %c0_i32_0 : i32, i32
  }
  func.func @transform_7(%arg0: i32) -> (i32, i32) {
    %c0_i32 = arith.constant 0 : i32
    %c0_i32_0 = arith.constant 0 : i32
    %c0_i32_1 = arith.constant 0 : i32
    return %c0_i32, %c0_i32_0 : i32, i32
  }
  func.func @transform_8(%arg0: i32) -> (i32, i32) {
    %c0_i32 = arith.constant 0 : i32
    %c0_i32_0 = arith.constant 0 : i32
    %c0_i32_1 = arith.constant 0 : i32
    return %c0_i32, %c0_i32_0 : i32, i32
  }
  func.func @transform_9(%arg0: i32) -> (i32, i32) {
    %c0_i32 = arith.constant 0 : i32
    %c0_i32_0 = arith.constant 0 : i32
    %c0_i32_1 = arith.constant 0 : i32
    return %c0_i32, %c0_i32_0 : i32, i32
  }
  func.func @transform_10(%arg0: i32) -> (i32, i32) {
    %c0_i32 = arith.constant 0 : i32
    %c0_i32_0 = arith.constant 0 : i32
    %c0_i32_1 = arith.constant 0 : i32
    return %c0_i32, %c0_i32_0 : i32, i32
  }
  func.func @transform_11(%arg0: i32) -> (i32, i32) {
    %c0_i32 = arith.constant 0 : i32
    %c0_i32_0 = arith.constant 0 : i32
    %c0_i32_1 = arith.constant 0 : i32
    return %c0_i32, %c0_i32_0 : i32, i32
  }
  func.func @transform_12(%arg0: i32) -> (i32, i32) {
    %c0_i32 = arith.constant 0 : i32
    %c0_i32_0 = arith.constant 0 : i32
    %c0_i32_1 = arith.constant 0 : i32
    return %c0_i32, %c0_i32_0 : i32, i32
  }
  func.func @transform_13(%arg0: i32) -> (i32, i32) {
    %c0_i32 = arith.constant 0 : i32
    %c0_i32_0 = arith.constant 0 : i32
    %c0_i32_1 = arith.constant 0 : i32
    return %c0_i32, %c0_i32_0 : i32, i32
  }
  func.func @transform_14(%arg0: i32) -> (i32, i32) {
    %c0_i32 = arith.constant 0 : i32
    %c0_i32_0 = arith.constant 0 : i32
    %c0_i32_1 = arith.constant 0 : i32
    return %c0_i32, %c0_i32_0 : i32, i32
  }
  func.func @transform_15(%arg0: i32) -> (i32, i32) {
    %c0_i32 = arith.constant 0 : i32
    %c0_i32_0 = arith.constant 0 : i32
    %c0_i32_1 = arith.constant 0 : i32
    return %c0_i32, %c0_i32_0 : i32, i32
  }
  func.func @transform_16(%arg0: i32) -> (i32, i32) {
    %c0_i32 = arith.constant 0 : i32
    %c0_i32_0 = arith.constant 0 : i32
    %c0_i32_1 = arith.constant 0 : i32
    return %c0_i32, %c0_i32_0 : i32, i32
  }
  func.func @transform_17(%arg0: i32) -> (i32, i32) {
    %c0_i32 = arith.constant 0 : i32
    %c0_i32_0 = arith.constant 0 : i32
    return %arg0, %c0_i32 : i32, i32
  }
  func.func @transform_18(%arg0: i32) -> (i32, i32) {
    %c0_i32 = arith.constant 0 : i32
    %c0_i32_0 = arith.constant 0 : i32
    return %arg0, %c0_i32 : i32, i32
  }
}

</mosaic_0001>

<bundles_post_ra>
// kernel: autoencoder_forward.1
= control target key start
LH: loop header
LB: loop body
LE: loop exit
PB: predicated region body
PF: predicated region fallthrough
CT: control target
= control target key end

     0   :  { %v2501_v44 = vmov 0.0   ;;  %vm2502_vm0 = vmmov 0   ;;  %vm472_vm1 = vcmask 130048   ;;  %s3202_s1 = inlined_call_operand.vmem [shape: bf16[784,128], index: 1, kind: input, shape index: {}]   ;;  %s3203_s0 = inlined_call_operand.vmem [shape: f32[8,784], index: 0, kind: input, shape index: {}]   ;;  %s3204_s3 = inlined_call_operand.vmem [shape: bf16[128,128], index: 3, kind: input, shape index: {}]   ;;  %s3205_s5 = inlined_call_operand.vmem [shape: bf16[128,128], index: 5, kind: input, shape index: {}]   ;;  %s3206_s2 = inlined_call_operand.vmem [shape: f32[1,128], index: 2, kind: input, shape index: {}]   ;;  %s3207_s7 = inlined_call_operand.vmem [shape: bf16[128,128], index: 7, kind: input, shape index: {}]   ;;  %s3208_s4 = inlined_call_operand.vmem [shape: f32[1,128], index: 4, kind: input, shape index: {}]   ;;  %s3209_s9 = inlined_call_operand.vmem [shape: bf16[128,128], index: 9, kind: input, shape index: {}]   ;;  %s3210_s6 = inlined_call_operand.vmem [shape: f32[1,128], index: 6, kind: input, shape index: {}]   ;;  %s3211_s11 = inlined_call_operand.vmem [shape: bf16[128,128], index: 11, kind: input, shape index: {}]   ;;  %s3212_s8 = inlined_call_operand.vmem [shape: f32[1,128], index: 8, kind: input, shape index: {}]   ;;  %s3213_s18 = inlined_call_operand.vmem [shape: f32[8,128], index: 18, kind: output, shape index: {1}]   ;;  %s3214_s13 = inlined_call_operand.vmem [shape: bf16[128,128], index: 13, kind: input, shape index: {}]   ;;  %s3215_s10 = inlined_call_operand.vmem [shape: f32[1,128], index: 10, kind: input, shape index: {}]   ;;  %s3216_s15 = inlined_call_operand.vmem [shape: bf16[128,784], index: 15, kind: input, shape index: {}]   ;;  %s3217_s12 = inlined_call_operand.vmem [shape: f32[1,128], index: 12, kind: input, shape index: {}]   ;;  %s3218_s14 = inlined_call_operand.vmem [shape: f32[1,128], index: 14, kind: input, shape index: {}]   ;;  %s3219_s16 = inlined_call_operand.vmem [shape: f32[1,784], index: 16, kind: input, shape index: {}]   ;;  %s3220_s17 = inlined_call_operand.vmem [shape: f32[8,784], index: 17, kind: output, shape index: {0}]  }
   0x1   :  { %3224 = sst [smem:[#allocation2_spill]] %s3202_s1 }
   0x2   :  { %3225 = sst [smem:[#allocation3_spill]] %s3203_s0  ;;  %s3227_s29 = sld [smem:[#allocation2_spill]] }
   0x3   :  { %3226 = sst [smem:[#allocation4_spill]] %s3204_s3  ;;  %s3228_s22 = sld [smem:[#allocation3_spill]] }
   0x4   :  { %s3229_s20 = sld [smem:[#allocation4_spill]] }
   0x8   :  { %v2324_v0 = vld [vmem:[%s3227_s29 + $0x40] sm:$0xff]   ;;  %v2328_v4 = vld [vmem:[%s3227_s29 + $0x48] sm:$0xff]   ;;  %v2332_v8 = vld [vmem:[%s3227_s29 + $0x50] sm:$0xff]  }
   0x9   :  { %v2325_v1 = vld [vmem:[%s3227_s29] sm:$0xff]   ;;  %2044 = vmatprep.subr.bf16.mxu0 %v2324_v0  ;;  %v2329_v5 = vld [vmem:[%s3227_s29 + $0x8] sm:$0xff]   ;;  %v2333_v9 = vld [vmem:[%s3227_s29 + $0x10] sm:$0xff]  }
   0xa   :  { %v2326_v2 = vld [vmem:[%s3227_s29 + $0xc0] sm:$0xff]   ;;  %2045 = vmatpush3.bf16.msra.mxu0 %v2325_v1  ;;  %v2330_v6 = vld [vmem:[%s3227_s29 + $0xc8] sm:$0xff]   ;;  %v2334_v10 = vld [vmem:[%s3227_s29 + $0xd0] sm:$0xff]  }
   0xb   :  { %v2327_v3 = vld [vmem:[%s3227_s29 + $0x80] sm:$0xff]   ;;  %2066 = vmatprep.subr.bf16.mxu1 %v2326_v2  ;;  %2046 = vmatprep.subr.bf16.mxu0 %v2328_v4  ;;  %v2331_v7 = vld [vmem:[%s3227_s29 + $0x88] sm:$0xff]   ;;  %v2335_v11 = vld [vmem:[%s3227_s29 + $0x90] sm:$0xff]  }
   0xc   :  { %2067 = vmatpush3.bf16.msra.mxu1 %v2327_v3  ;;  %v2336_v12 = vld [vmem:[%s3227_s29 + $0x58] sm:$0xff]   ;;  %v2340_v16 = vld [vmem:[%s3227_s29 + $0x60] sm:$0xff]   ;;  %v2344_v20 = vld [vmem:[%s3227_s29 + $0x68] sm:$0xff]  }
   0xd   :  { %2068 = vmatprep.subr.bf16.mxu1 %v2330_v6  ;;  %v2337_v13 = vld [vmem:[%s3227_s29 + $0x18] sm:$0xff]   ;;  %v2341_v17 = vld [vmem:[%s3227_s29 + $0x20] sm:$0xff]   ;;  %v2345_v21 = vld [vmem:[%s3227_s29 + $0x28] sm:$0xff]  }
   0xe   :  { %2047 = vmatpush3.bf16.msra.mxu0 %v2329_v5  ;;  %v2338_v14 = vld [vmem:[%s3227_s29 + $0xd8] sm:$0xff]   ;;  %v2342_v18 = vld [vmem:[%s3227_s29 + $0xe0] sm:$0xff]   ;;  %v2346_v22 = vld [vmem:[%s3227_s29 + $0xe8] sm:$0xff]  }
   0xf   :  { %2048 = vmatprep.subr.bf16.mxu0 %v2332_v8  ;;  %v2339_v15 = vld [vmem:[%s3227_s29 + $0x98] sm:$0xff]   ;;  %v2343_v19 = vld [vmem:[%s3227_s29 + $0xa0] sm:$0xff]   ;;  %v2347_v23 = vld [vmem:[%s3227_s29 + $0xa8] sm:$0xff]  }
  0x10   :  { %2069 = vmatpush3.bf16.msra.mxu1 %v2331_v7  ;;  %v2348_v24 = vld [vmem:[%s3227_s29 + $0x70] sm:$0xff]   ;;  %v2352_v28 = vld [vmem:[%s3227_s29 + $0x78] sm:$0xff]   ;;  %v60_v31 = vld [vmem:[%s3228_s22 + $0x8] sm:$0xff] }
  0x11   :  { %2070 = vmatprep.subr.bf16.mxu1 %v2334_v10  ;;  %v2349_v25 = vld [vmem:[%s3227_s29 + $0x30] sm:$0xff]   ;;  %v2353_v29 = vld [vmem:[%s3227_s29 + $0x38] sm:$0xff]   ;;  %v67_v32 = vpack.c.bf16 %v60_v31, %v60_v31  ;;  %v59_v34 = vld [vmem:[%s3228_s22] sm:$0xff] }
  0x12   :  { %2049 = vmatpush3.bf16.msra.mxu0 %v2333_v9  ;;  %v2350_v26 = vld [vmem:[%s3227_s29 + $0xf0] sm:$0xff]   ;;  %v2354_v30 = vld [vmem:[%s3227_s29 + $0xf8] sm:$0xff]   ;;  %v66_v35 = vpack.c.bf16 %v59_v34, %v59_v34  ;;  %v2356_v36 = vld [vmem:[%s3227_s29 + $0x140] sm:$0xff]  }
  0x13   :  { %2050 = vmatprep.subr.bf16.mxu0 %v2336_v12  ;;  %v2351_v27 = vld [vmem:[%s3227_s29 + $0xb0] sm:$0xff]   ;;  %v2355_v33 = vld [vmem:[%s3227_s29 + $0xb8] sm:$0xff]   ;;  %508 = vmatprep.mubr.bf16.mxu0 %v67_v32  ;;  %v2357_v39 = vld [vmem:[%s3227_s29 + $0x100] sm:$0xff]  }
  0x14   :  { %2071 = vmatpush3.bf16.msra.mxu1 %v2335_v11  ;;  %v62_v37 = vld [vmem:[%s3228_s22 + $0x18] sm:$0xff]  ;;  %v61_v40 = vld [vmem:[%s3228_s22 + $0x10] sm:$0xff]  ;;  %v2358_v42 = vld [vmem:[%s3227_s29 + $0x148] sm:$0xff]  }
  0x15   :  { %2072 = vmatprep.subr.bf16.mxu1 %v2338_v14  ;;  %v69_v38 = vpack.c.bf16 %v62_v37, %v62_v37  ;;  %v68_v41 = vpack.c.bf16 %v61_v40, %v61_v40  ;;  %v2359_v43 = vld [vmem:[%s3227_s29 + $0x108] sm:$0xff]   ;;  %v2360_v45 = vld [vmem:[%s3227_s29 + $0x150] sm:$0xff]   ;;  %v2362_v47 = vld [vmem:[%s3227_s29 + $0x158] sm:$0xff]  }
  0x16   :  { %2051 = vmatpush3.bf16.msra.mxu0 %v2337_v13  ;;  %v2361_v46 = vld [vmem:[%s3227_s29 + $0x110] sm:$0xff]   ;;  %v2363_v48 = vld [vmem:[%s3227_s29 + $0x118] sm:$0xff]   ;;  %v2364_v49 = vld [vmem:[%s3227_s29 + $0x160] sm:$0xff]  }
  0x17   :  { %2052 = vmatprep.subr.bf16.mxu0 %v2340_v16  ;;  %548 = vmatprep.mubr.bf16.mxu1 %v69_v38  ;;  %v2365_v50 = vld [vmem:[%s3227_s29 + $0x120] sm:$0xff]   ;;  %v2366_v51 = vld [vmem:[%s3227_s29 + $0x168] sm:$0xff]   ;;  %v65_v55 = vld [vmem:[%s3228_s22 + $0x30] sm:$0xff] }
  0x18   :  { %2073 = vmatpush3.bf16.msra.mxu1 %v2339_v15  ;;  %v2372_v52 = vld [vmem:[%s3227_s29 + $0x180] sm:$0xff]   ;;  %v64_v53 = vld [vmem:[%s3228_s22 + $0x28] sm:$0xff]  ;;  %v72_v57 = vpack.c.bf16 %v65_v55, %v65_v55  ;;  %v2368_v58 = vld [vmem:[%s3227_s29 + $0x170] sm:$0xff]  }
  0x19   :  { %2074 = vmatprep.subr.bf16.mxu1 %v2342_v18  ;;  %v71_v54 = vpack.c.bf16 %v64_v53, %v64_v53  ;;  %v2367_v56 = vld [vmem:[%s3227_s29 + $0x128] sm:$0xff]   ;;  %v2369_v59 = vld [vmem:[%s3227_s29 + $0x130] sm:$0xff]   ;;  %v2370_v60 = vld [vmem:[%s3227_s29 + $0x178] sm:$0xff]  }
  0x1a   :  { %2053 = vmatpush3.bf16.msra.mxu0 %v2341_v17  ;;  %v2371_v61 = vld [vmem:[%s3227_s29 + $0x138] sm:$0xff]   ;;  %v63_v62 = vld [vmem:[%s3228_s22 + $0x20] sm:$0xff]  ;;  %v2374_v1 = vld [vmem:[%s3229_s20 + $0x8] sm:$0xff]  }
  0x1b   :  { %2054 = vmatprep.subr.bf16.mxu0 %v2344_v20  ;;  %v70_v63 = vpack.c.bf16 %v63_v62, %v63_v62  ;;  %v2373_v0 = vld [vmem:[%s3229_s20] sm:$0xff]   ;;  %v2375_v2 = vld [vmem:[%s3229_s20 + $0x10] sm:$0xff]   ;;  %v2376_v3 = vld [vmem:[%s3229_s20 + $0x18] sm:$0xff]  }
  0x1c   :  { %2075 = vmatpush3.bf16.msra.mxu1 %v2343_v19  ;;  %v2377_v4 = vld [vmem:[%s3229_s20 + $0x20] sm:$0xff]   ;;  %v2378_v5 = vld [vmem:[%s3229_s20 + $0x28] sm:$0xff]   ;;  %v2379_v6 = vld [vmem:[%s3229_s20 + $0x30] sm:$0xff]  }
  0x1d   :  { %2076 = vmatprep.subr.bf16.mxu1 %v2346_v22  ;;  %v2380_v7 = vld [vmem:[%s3229_s20 + $0x38] sm:$0xff]   ;;  %v2381_v8 = vld [vmem:[%s3205_s5] sm:$0xff]   ;;  %v2382_v9 = vld [vmem:[%s3205_s5 + $0x8] sm:$0xff]  }
  0x1e   :  { %2055 = vmatpush3.bf16.msra.mxu0 %v2345_v21  ;;  %v2383_v10 = vld [vmem:[%s3205_s5 + $0x10] sm:$0xff]   ;;  %v2384_v11 = vld [vmem:[%s3205_s5 + $0x18] sm:$0xff]   ;;  %v2385_v12 = vld [vmem:[%s3205_s5 + $0x20] sm:$0xff]  }
  0x1f   :  { %2056 = vmatprep.subr.bf16.mxu0 %v2348_v24  ;;  %v2386_v13 = vld [vmem:[%s3205_s5 + $0x28] sm:$0xff]   ;;  %v1883_v15 = vld [vmem:[%s3206_s2] ss:$0 sm:$0xff]  ;;  %v2387_v40 = vld [vmem:[%s3205_s5 + $0x30] sm:$0xff]  }
  0x20   :  { %2077 = vmatpush3.bf16.msra.mxu1 %v2347_v23  ;;  %v2400_v62 = vld [vmem:[%s3209_s9 + $0x18] sm:$0xff]  }
  0x21   :  { %2078 = vmatprep.subr.bf16.mxu1 %v2350_v26 }
  0x22   :  { %2057 = vmatpush3.bf16.msra.mxu0 %v2349_v25 }
  0x23   :  { %2058 = vmatprep.subr.bf16.mxu0 %v2352_v28 }
  0x24   :  { %2079 = vmatpush3.bf16.msra.mxu1 %v2351_v27 }
  0x25   :  { %2080 = vmatprep.subr.bf16.mxu1 %v2354_v30 }
  0x26   :  { %2059 = vmatpush3.bf16.msra.mxu0 %v2353_v29 }
  0x27   :  { %2088 = vmatprep.subr.bf16.mxu0 %v2356_v36 }
  0x28   :  { %2081 = vmatpush3.bf16.msra.mxu1 %v2355_v33 }
  0x29   :  { %509 = vmatmul.mubr.bf16.vlgmr.msra.gmra.mrb[0].mxu0 %v66_v35  ;;  %2175 = vmatprep.subr.bf16.mxu1 %v2501_v44 }
  0x2a   :  { %2089 = vmatpush3.bf16.msra.mxu0 %v2357_v39  ;;  %588 = vmatprep.mubr.bf16.mxu0 %v71_v54 }
  0x2b   :  { %549 = vmatmul.mubr.bf16.vlgmr.msra.gmra.mrb[0].mxu1 %v68_v41  ;;  %2090 = vmatprep.subr.bf16.mxu0 %v2358_v42  ;;  %v2388_v41 = vld [vmem:[%s3205_s5 + $0x38] sm:$0xff]   ;;  %v2389_v42 = vld [vmem:[%s3207_s7] sm:$0xff]  }
  0x2c   :  { %2177 = vmatprep.mubr.msk.bf16.mxu1 %vm2502_vm0, %v2501_v44  ;;  %2176 = vmatpush3.bf16.msra.mxu1 %v2372_v52 }
  0x2d   :  { %2181 = vmatprep.subr.bf16.mxu1 %v2501_v44 }
  0x2e   :  { %2091 = vmatpush3.bf16.msra.mxu0 %v2359_v43  ;;  %v2390_v43 = vld [vmem:[%s3207_s7 + $0x8] sm:$0xff]  }
  0x2f   :  { %2092 = vmatprep.subr.bf16.mxu0 %v2360_v45  ;;  %v2391_v45 = vld [vmem:[%s3207_s7 + $0x10] sm:$0xff]  }
  0x32   :  { %2093 = vmatpush3.bf16.msra.mxu0 %v2361_v46  ;;  %v2392_v46 = vld [vmem:[%s3207_s7 + $0x18] sm:$0xff]  }
  0x33   :  { %2094 = vmatprep.subr.bf16.mxu0 %v2362_v47  ;;  %2178 = vmatmul.mubr.msk.bf16.vlgmr.msra.gmra.mrb[4].mxu1 %vm472_vm1, %v72_v57  ;;  %v2393_v47 = vld [vmem:[%s3207_s7 + $0x20] sm:$0xff]   ;;  %v2395_v57 = vld [vmem:[%s3207_s7 + $0x30] sm:$0xff]  }
  0x34   :  { %2197 = vmatprep.mubr.msk.bf16.mxu1 %vm2502_vm0, %v2501_v44  ;;  %2182 = vmatpush3.bf16.msra.mxu1 %v2373_v0  ;;  %v2402_v0 = vld [vmem:[%s3209_s9 + $0x28] sm:$0xff]  }
  0x35   :  { %2183 = vmatprep.subr.bf16.mxu1 %v2501_v44 }
  0x36   :  { %2095 = vmatpush3.bf16.msra.mxu0 %v2363_v48  ;;  %v2394_v48 = vld [vmem:[%s3207_s7 + $0x28] sm:$0xff]  }
  0x37   :  { %2096 = vmatprep.subr.bf16.mxu0 %v2364_v49  ;;  %v1934_v49 = vld [vmem:[%s3208_s4] ss:$0 sm:$0xff] }
  0x38   :  { %2184 = vmatpush3.bf16.msra.mxu1 %v2374_v1  ;;  %v2403_v1 = vld [vmem:[%s3209_s9 + $0x30] sm:$0xff]  }
  0x39   :  { %2185 = vmatprep.subr.bf16.mxu1 %v2501_v44 }
  0x3a   :  { %2097 = vmatpush3.bf16.msra.mxu0 %v2365_v50 }
  0x3b   :  { %2098 = vmatprep.subr.bf16.mxu0 %v2366_v51 }
  0x3c   :  { %2186 = vmatpush3.bf16.msra.mxu1 %v2375_v2  ;;  %v1943_v2 = vld [vmem:[%s3210_s6] ss:$0 sm:$0xff] }
  0x3d   :  { %2187 = vmatprep.subr.bf16.mxu1 %v2501_v44 }
  0x3e   :  { %2099 = vmatpush3.bf16.msra.mxu0 %v2367_v56 }
  0x3f   :  { %2100 = vmatprep.subr.bf16.mxu0 %v2368_v58  ;;  %v2396_v58 = vld [vmem:[%s3207_s7 + $0x38] sm:$0xff]  }
  0x40   :  { %2188 = vmatpush3.bf16.msra.mxu1 %v2376_v3 }
  0x41   :  { %2189 = vmatprep.subr.bf16.mxu1 %v2501_v44 }
  0x42   :  { %2101 = vmatpush3.bf16.msra.mxu0 %v2369_v59  ;;  %v2397_v59 = vld [vmem:[%s3209_s9] sm:$0xff]  }
  0x43   :  { %2102 = vmatprep.subr.bf16.mxu0 %v2370_v60  ;;  %v2398_v60 = vld [vmem:[%s3209_s9 + $0x8] sm:$0xff]  }
  0x44   :  { %2190 = vmatpush3.bf16.msra.mxu1 %v2377_v4 }
  0x45   :  { %2191 = vmatprep.subr.bf16.mxu1 %v2501_v44 }
  0x46   :  { %2103 = vmatpush3.bf16.msra.mxu0 %v2371_v61  ;;  %v2399_v61 = vld [vmem:[%s3209_s9 + $0x10] sm:$0xff]  }
  0x47   :  { %2201 = vmatprep.subr.bf16.mxu0 %v2501_v44 }
  0x48   :  { %2192 = vmatpush3.bf16.msra.mxu1 %v2378_v5 }
  0x49   :  { %589 = vmatmul.mubr.bf16.vlgmr.msra.gmra.mrb[4].mxu0 %v70_v63  ;;  %2193 = vmatprep.subr.bf16.mxu1 %v2501_v44  ;;  %v2401_v63 = vld [vmem:[%s3209_s9 + $0x20] sm:$0xff]  }
  0x4a   :  { %2217 = vmatprep.mubr.msk.bf16.mxu0 %vm2502_vm0, %v2501_v44  ;;  %2202 = vmatpush3.bf16.msra.mxu0 %v2381_v8 }
  0x4b   :  { %2203 = vmatprep.subr.bf16.mxu0 %v2501_v44 }
  0x4c   :  { %2194 = vmatpush3.bf16.msra.mxu1 %v2379_v6 }
  0x4d   :  { %2195 = vmatprep.subr.bf16.mxu1 %v2501_v44 }
  0x4e   :  { %2204 = vmatpush3.bf16.msra.mxu0 %v2382_v9 }
  0x4f   :  { %2205 = vmatprep.subr.bf16.mxu0 %v2501_v44 }
  0x50   :  { %2196 = vmatpush3.bf16.msra.mxu1 %v2380_v7 }
  0x51   :  { %2221 = vmatprep.subr.bf16.mxu1 %v2501_v44 }
  0x52   :  { %2206 = vmatpush3.bf16.msra.mxu0 %v2383_v10  ;;  %v2404_v10 = vld [vmem:[%s3209_s9 + $0x38] sm:$0xff]  }
  0x53   :  { %2207 = vmatprep.subr.bf16.mxu0 %v2501_v44 }
  0x56   :  { %2208 = vmatpush3.bf16.msra.mxu0 %v2384_v11  ;;  %v2405_v11 = vld [vmem:[%s3211_s11] sm:$0xff]  }
  0x57   :  { %2209 = vmatprep.subr.bf16.mxu0 %v2501_v44 }
  0x5a   :  { %2210 = vmatpush3.bf16.msra.mxu0 %v2385_v12  ;;  %v2406_v12 = vld [vmem:[%s3211_s11 + $0x8] sm:$0xff]  }
  0x5b   :  { %2211 = vmatprep.subr.bf16.mxu0 %v2501_v44 }
  0x5e   :  { %2212 = vmatpush3.bf16.msra.mxu0 %v2386_v13  ;;  %v2407_v13 = vld [vmem:[%s3211_s11 + $0x10] sm:$0xff]  }
  0x5f   :  { %2213 = vmatprep.subr.bf16.mxu0 %v2501_v44 }
  0x62   :  { %2214 = vmatpush3.bf16.msra.mxu0 %v2387_v40  ;;  %v2419_v40 = vld [vmem:[%s3214_s13 + $0x30] sm:$0xff]  }
  0x63   :  { %2215 = vmatprep.subr.bf16.mxu0 %v2501_v44 }
  0x66   :  { %2216 = vmatpush3.bf16.msra.mxu0 %v2388_v41  ;;  %v2420_v41 = vld [vmem:[%s3214_s13 + $0x38] sm:$0xff]  }
  0x67   :  { %2241 = vmatprep.subr.bf16.mxu0 %v2501_v44 }
  0xfc   :  { %v2060_v14 = vpop.f32.mrb[0].mxu0 }
  0xfd   :  { %v2061_v16 = vpop.f32.mrb[1].mxu0 }
  0xfe   :  { %v2062_v17 = vadd.f32 %v2061_v16, %v2060_v14  ;;  %v2063_v18 = vpop.f32.mrb[2].mxu0  ;;  %v2082_v19 = vpop.f32.mrb[0].mxu1  ;;  %v2408_v14 = vld [vmem:[%s3211_s11 + $0x18] sm:$0xff]   ;;  %v2410_v16 = vld [vmem:[%s3211_s11 + $0x28] sm:$0xff]  }
  0xff   :  { %v2064_v20 = vpop.f32.mrb[3].mxu0  ;;  %v2083_v22 = vpop.f32.mrb[1].mxu1 }
 0x100   :  { %v511_v21 = vadd.f32 %v2062_v17, %v1883_v15  ;;  %v2084_v23 = vadd.f32 %v2083_v22, %v2082_v19  ;;  %v2085_v24 = vpop.f32.mrb[2].mxu1  ;;  %v2409_v15 = vld [vmem:[%s3211_s11 + $0x20] sm:$0xff]  }
 0x101   :  { %v2086_v25 = vpop.f32.mrb[3].mxu1  ;;  %v1952_v17 = vld [vmem:[%s3212_s8] ss:$0 sm:$0xff]  ;;  %v2411_v24 = vld [vmem:[%s3211_s11 + $0x30] sm:$0xff]  }
 0x102   :  { %v551_v26 = vadd.f32 %v2084_v23, %v511_v21  ;;  %v2412_v25 = vld [vmem:[%s3211_s11 + $0x38] sm:$0xff]  }
 0x106   :  { %v630_v27 = vpop.f32.mrb[4].mxu1 }
 0x107   :  { %v2179_v28 = vpop.f32.mrb[5].mxu1 }
 0x108   :  { %v633_v29 = vpop.f32.mrb[6].mxu1  ;;  %v2415_v28 = vld [vmem:[%s3214_s13 + $0x10] sm:$0xff]  }
 0x109   :  { %v2180_v30 = vpop.f32.mrb[7].mxu1  ;;  %v2416_v29 = vld [vmem:[%s3214_s13 + $0x18] sm:$0xff]  }
 0x10a   :  { %v2417_v30 = vld [vmem:[%s3214_s13 + $0x20] sm:$0xff]  }
 0x11c   :  { %v2104_v31 = vpop.f32.mrb[4].mxu0 }
 0x11d   :  { %v2105_v32 = vpop.f32.mrb[5].mxu0 }
 0x11e   :  { %v2106_v33 = vadd.f32 %v2105_v32, %v2104_v31  ;;  %v2107_v34 = vpop.f32.mrb[6].mxu0  ;;  %v2418_v31 = vld [vmem:[%s3214_s13 + $0x28] sm:$0xff]   ;;  %v1961_v32 = vld [vmem:[%s3215_s10] ss:$0 sm:$0xff] }
 0x11f   :  { %v2108_v35 = vpop.f32.mrb[7].mxu0 }
 0x120   :  { %v591_v36 = vadd.f32 %v2106_v33, %v551_v26  ;;  %v2413_v26 = vld [vmem:[%s3214_s13] sm:$0xff]  }
 0x122   :  { %v631_v37 = vadd.f32 %v630_v27, %v591_v36  ;;  %v2414_v27 = vld [vmem:[%s3214_s13 + $0x8] sm:$0xff]  }
 0x124   :  { %v636_v38 = vmax.f32 %v631_v37, 0.0 }
 0x126   :  { %v637_v39 = vpack.c.bf16 %v636_v38, %v636_v38 }
 0x128   :  { %2198 = vmatmul.mubr.bf16.vlgmr.msra.gmra.mrb[8].mxu1 %v637_v39 }
 0x129   :  { %2237 = vmatprep.mubr.msk.bf16.mxu1 %vm2502_vm0, %v2501_v44  ;;  %2222 = vmatpush3.bf16.msra.mxu1 %v2389_v42  ;;  %v2421_v42 = vld [vmem:[%s3216_s15] ss:$28 sps:$4 sm:$0xff]  }
 0x12a   :  { %2223 = vmatprep.subr.bf16.mxu1 %v2501_v44 }
 0x12d   :  { %2224 = vmatpush3.bf16.msra.mxu1 %v2390_v43  ;;  %v2423_v43 = vld [vmem:[%s3216_s15 + $0x4] ss:$28 sps:$4 sm:$0xff]  }
 0x12e   :  { %2225 = vmatprep.subr.bf16.mxu1 %v2501_v44 }
 0x131   :  { %2226 = vmatpush3.bf16.msra.mxu1 %v2391_v45  ;;  %v2426_v45 = vld [vmem:[%s3216_s15 + $0xc] ss:$28 sps:$4 sm:$0xff]  }
 0x132   :  { %2227 = vmatprep.subr.bf16.mxu1 %v2501_v44 }
 0x135   :  { %2228 = vmatpush3.bf16.msra.mxu1 %v2392_v46  ;;  %v2429_v46 = vld [vmem:[%s3216_s15 + $0x3c] ss:$28 sps:$4 sm:$0xff]  }
 0x136   :  { %2229 = vmatprep.subr.bf16.mxu1 %v2501_v44 }
 0x139   :  { %2230 = vmatpush3.bf16.msra.mxu1 %v2393_v47  ;;  %v2427_v47 = vld [vmem:[%s3216_s15 + $0x38] ss:$28 sps:$4 sm:$0xff]  }
 0x13a   :  { %2231 = vmatprep.subr.bf16.mxu1 %v2501_v44 }
 0x13d   :  { %2232 = vmatpush3.bf16.msra.mxu1 %v2394_v48  ;;  %v2435_v48 = vld [vmem:[%s3216_s15 + $0x74] ss:$28 sps:$4 sm:$0xff]  }
 0x13e   :  { %2233 = vmatprep.subr.bf16.mxu1 %v2501_v44 }
 0x141   :  { %2234 = vmatpush3.bf16.msra.mxu1 %v2395_v57  ;;  %v2457_v57 = vld [vmem:[%s3216_s15 + $0x150] ss:$28 sps:$4 sm:$0xff]  }
 0x142   :  { %2235 = vmatprep.subr.bf16.mxu1 %v2501_v44 }
 0x145   :  { %2236 = vmatpush3.bf16.msra.mxu1 %v2396_v58  ;;  %v1970_v58 = vld [vmem:[%s3217_s12] ss:$0 sm:$0xff] }
 0x146   :  { %2261 = vmatprep.subr.bf16.mxu1 %v2501_v44 }
 0x1fb   :  { %v743_v50 = vpop.f32.mrb[8].mxu1 }
 0x1fc   :  { %v744_v51 = vadd.f32 %v1934_v49, %v743_v50  ;;  %v2199_v52 = vpop.f32.mrb[9].mxu1  ;;  %v2433_v49 = vld [vmem:[%s3216_s15 + $0x70] ss:$28 sps:$4 sm:$0xff]  }
 0x1fd   :  { %v746_v53 = vpop.f32.mrb[10].mxu1  ;;  %v2441_v50 = vld [vmem:[%s3216_s15 + $0xac] ss:$28 sps:$4 sm:$0xff]   ;;  %v2447_v52 = vld [vmem:[%s3216_s15 + $0xe4] ss:$28 sps:$4 sm:$0xff]  }
 0x1fe   :  { %v749_v54 = vmax.f32 %v744_v51, 0.0  ;;  %v2200_v55 = vpop.f32.mrb[11].mxu1  ;;  %v2439_v51 = vld [vmem:[%s3216_s15 + $0xa8] ss:$28 sps:$4 sm:$0xff]   ;;  %v2445_v53 = vld [vmem:[%s3216_s15 + $0xe0] ss:$28 sps:$4 sm:$0xff]  }
 0x1ff   :  { %v2451_v55 = vld [vmem:[%s3216_s15 + $0x118] ss:$28 sps:$4 sm:$0xff]  }
 0x200   :  { %v750_v56 = vpack.c.bf16 %v749_v54, %v749_v54  ;;  %v2453_v54 = vld [vmem:[%s3216_s15 + $0x11c] ss:$28 sps:$4 sm:$0xff]  }
 0x202   :  { %2218 = vmatmul.mubr.bf16.vlgmr.msra.gmra.mrb[8].mxu0 %v750_v56  ;;  %v2459_v56 = vld [vmem:[%s3216_s15 + $0x154] ss:$28 sps:$4 sm:$0xff]  }
 0x203   :  { %2257 = vmatprep.mubr.msk.bf16.mxu0 %vm2502_vm0, %v2501_v44  ;;  %2242 = vmatpush3.bf16.msra.mxu0 %v2397_v59 }
 0x204   :  { %2243 = vmatprep.subr.bf16.mxu0 %v2501_v44 }
 0x207   :  { %2244 = vmatpush3.bf16.msra.mxu0 %v2398_v60 }
 0x208   :  { %2245 = vmatprep.subr.bf16.mxu0 %v2501_v44 }
 0x20b   :  { %2246 = vmatpush3.bf16.msra.mxu0 %v2399_v61 }
 0x20c   :  { %2247 = vmatprep.subr.bf16.mxu0 %v2501_v44 }
 0x20f   :  { %2248 = vmatpush3.bf16.msra.mxu0 %v2400_v62 }
 0x210   :  { %2249 = vmatprep.subr.bf16.mxu0 %v2501_v44 }
 0x213   :  { %2250 = vmatpush3.bf16.msra.mxu0 %v2401_v63 }
 0x214   :  { %2251 = vmatprep.subr.bf16.mxu0 %v2501_v44 }
 0x217   :  { %2252 = vmatpush3.bf16.msra.mxu0 %v2402_v0 }
 0x218   :  { %2253 = vmatprep.subr.bf16.mxu0 %v2501_v44 }
 0x21b   :  { %2254 = vmatpush3.bf16.msra.mxu0 %v2403_v1  ;;  %v2424_v1 = vld [vmem:[%s3216_s15 + $0x8] ss:$28 sps:$4 sm:$0xff]  }
 0x21c   :  { %2255 = vmatprep.subr.bf16.mxu0 %v2501_v44 }
 0x21f   :  { %2256 = vmatpush3.bf16.msra.mxu0 %v2404_v10  ;;  %v2448_v10 = vld [vmem:[%s3216_s15 + $0xe8] ss:$28 sps:$4 sm:$0xff]  }
 0x220   :  { %2281 = vmatprep.subr.bf16.mxu0 %v2501_v44 }
 0x2d5   :  { %v856_v3 = vpop.f32.mrb[8].mxu0 }
 0x2d6   :  { %v857_v4 = vadd.f32 %v1943_v2, %v856_v3  ;;  %v2219_v5 = vpop.f32.mrb[9].mxu0  ;;  %v2432_v3 = vld [vmem:[%s3216_s15 + $0x44] ss:$28 sps:$4 sm:$0xff]  }
 0x2d7   :  { %v859_v6 = vpop.f32.mrb[10].mxu0  ;;  %v2438_v5 = vld [vmem:[%s3216_s15 + $0x7c] ss:$28 sps:$4 sm:$0xff]  }
 0x2d8   :  { %v862_v7 = vmax.f32 %v857_v4, 0.0  ;;  %v2220_v8 = vpop.f32.mrb[11].mxu0  ;;  %v2430_v4 = vld [vmem:[%s3216_s15 + $0x40] ss:$28 sps:$4 sm:$0xff]   ;;  %v2436_v6 = vld [vmem:[%s3216_s15 + $0x78] ss:$28 sps:$4 sm:$0xff]  }
 0x2d9   :  { %v2442_v8 = vld [vmem:[%s3216_s15 + $0xb0] ss:$28 sps:$4 sm:$0xff]  }
 0x2da   :  { %v863_v9 = vpack.c.bf16 %v862_v7, %v862_v7  ;;  %v2444_v7 = vld [vmem:[%s3216_s15 + $0xb4] ss:$28 sps:$4 sm:$0xff]  }
 0x2dc   :  { %2238 = vmatmul.mubr.bf16.vlgmr.msra.gmra.mrb[12].mxu1 %v863_v9  ;;  %v2450_v9 = vld [vmem:[%s3216_s15 + $0xec] ss:$28 sps:$4 sm:$0xff]  }
 0x2dd   :  { %2277 = vmatprep.mubr.msk.bf16.mxu1 %vm2502_vm0, %v2501_v44  ;;  %2262 = vmatpush3.bf16.msra.mxu1 %v2405_v11  ;;  %v2456_v11 = vld [vmem:[%s3216_s15 + $0x124] ss:$28 sps:$4 sm:$0xff]  }
 0x2de   :  { %2263 = vmatprep.subr.bf16.mxu1 %v2501_v44 }
 0x2e1   :  { %2264 = vmatpush3.bf16.msra.mxu1 %v2406_v12  ;;  %v2454_v12 = vld [vmem:[%s3216_s15 + $0x120] ss:$28 sps:$4 sm:$0xff]  }
 0x2e2   :  { %2265 = vmatprep.subr.bf16.mxu1 %v2501_v44 }
 0x2e5   :  { %2266 = vmatpush3.bf16.msra.mxu1 %v2407_v13  ;;  %v2462_v13 = vld [vmem:[%s3216_s15 + $0x15c] ss:$28 sps:$4 sm:$0xff]  }
 0x2e6   :  { %2267 = vmatprep.subr.bf16.mxu1 %v2501_v44 }
 0x2e9   :  { %2268 = vmatpush3.bf16.msra.mxu1 %v2408_v14  ;;  %v2460_v14 = vld [vmem:[%s3216_s15 + $0x158] ss:$28 sps:$4 sm:$0xff]  }
 0x2ea   :  { %2269 = vmatprep.subr.bf16.mxu1 %v2501_v44 }
 0x2ed   :  { %2270 = vmatpush3.bf16.msra.mxu1 %v2409_v15  ;;  %v2465_v15 = vld [vmem:[%s3216_s15 + $0x18c] ss:$28 sps:$4 sm:$0xff]  }
 0x2ee   :  { %2271 = vmatprep.subr.bf16.mxu1 %v2501_v44 }
 0x2f1   :  { %2272 = vmatpush3.bf16.msra.mxu1 %v2410_v16  ;;  %v2468_v16 = vld [vmem:[%s3216_s15 + $0x194] ss:$28 sps:$4 sm:$0xff]  }
 0x2f2   :  { %2273 = vmatprep.subr.bf16.mxu1 %v2501_v44 }
 0x2f5   :  { %2274 = vmatpush3.bf16.msra.mxu1 %v2411_v24 }
 0x2f6   :  { %2275 = vmatprep.subr.bf16.mxu1 %v2501_v44 }
 0x2f9   :  { %2276 = vmatpush3.bf16.msra.mxu1 %v2412_v25 }
 0x2fa   :  { %1705 = vmatprep.subr.bf16.mxu1 %v2423_v43  ;;  %v2491_v43 = vld [vmem:[%s3216_s15 + $0x12c] ss:$28 sps:$4 sm:$0xff]  }
 0x3af   :  { %v969_v18 = vpop.f32.mrb[12].mxu1 }
 0x3b0   :  { %v970_v19 = vadd.f32 %v1952_v17, %v969_v18  ;;  %v2239_v20 = vpop.f32.mrb[13].mxu1  ;;  %v2463_v17 = vld [vmem:[%s3216_s15 + $0x188] ss:$28 sps:$4 sm:$0xff]   ;;  %v2466_v18 = vld [vmem:[%s3216_s15 + $0x190] ss:$28 sps:$4 sm:$0xff]  }
 0x3b1   :  { %v972_v21 = vpop.f32.mrb[14].mxu1  ;;  %v2503_v20 = vmov 0  }
 0x3b2   :  { %975 = vst [vmem:[%s3213_s18] sm:$0xff] %v970_v19  ;;  %v976_v22 = vpack.c.bf16 %v970_v19, %v970_v19  ;;  %v2240_v23 = vpop.f32.mrb[15].mxu1  ;;  %v2471_v19 = vld [vmem:[%s3216_s15 + $0x14] ss:$28 sps:$4 sm:$0xff]   ;;  %v1979_v21 = vld [vmem:[%s3218_s14] ss:$0 sm:$0xff] }
 0x3b4   :  { %2258 = vmatmul.mubr.bf16.vlgmr.msra.gmra.mrb[12].mxu0 %v976_v22 }
 0x3b5   :  { %2297 = vmatprep.mubr.msk.bf16.mxu0 %vm2502_vm0, %v2501_v44  ;;  %2282 = vmatpush3.bf16.msra.mxu0 %v2413_v26 }
 0x3b6   :  { %2283 = vmatprep.subr.bf16.mxu0 %v2501_v44 }
 0x3b9   :  { %2284 = vmatpush3.bf16.msra.mxu0 %v2414_v27 }
 0x3ba   :  { %2285 = vmatprep.subr.bf16.mxu0 %v2501_v44 }
 0x3bd   :  { %2286 = vmatpush3.bf16.msra.mxu0 %v2415_v28  ;;  %v2469_v28 = vld [vmem:[%s3216_s15 + $0x10] ss:$28 sps:$4 sm:$0xff]  }
 0x3be   :  { %2287 = vmatprep.subr.bf16.mxu0 %v2501_v44 }
 0x3c1   :  { %2288 = vmatpush3.bf16.msra.mxu0 %v2416_v29  ;;  %v2472_v29 = vld [vmem:[%s3216_s15 + $0x18] ss:$28 sps:$4 sm:$0xff]  }
 0x3c2   :  { %2289 = vmatprep.subr.bf16.mxu0 %v2501_v44 }
 0x3c5   :  { %2290 = vmatpush3.bf16.msra.mxu0 %v2417_v30 }
 0x3c6   :  { %2291 = vmatprep.subr.bf16.mxu0 %v2501_v44 }
 0x3c9   :  { %2292 = vmatpush3.bf16.msra.mxu0 %v2418_v31  ;;  %v2475_v31 = vld [vmem:[%s3216_s15 + $0x4c] ss:$28 sps:$4 sm:$0xff]  }
 0x3ca   :  { %2293 = vmatprep.subr.bf16.mxu0 %v2501_v44 }
 0x3cd   :  { %2294 = vmatpush3.bf16.msra.mxu0 %v2419_v40  ;;  %v2487_v40 = vld [vmem:[%s3216_s15 + $0xf4] ss:$28 sps:$4 sm:$0xff]  }
 0x3ce   :  { %2295 = vmatprep.subr.bf16.mxu0 %v2501_v44 }
 0x3d1   :  { %2296 = vmatpush3.bf16.msra.mxu0 %v2420_v41  ;;  %v2485_v41 = vld [vmem:[%s3216_s15 + $0xf0] ss:$28 sps:$4 sm:$0xff]  }
 0x3d2   :  { %1746 = vmatprep.subr.bf16.mxu0 %v2426_v45  ;;  %v2489_v45 = vld [vmem:[%s3216_s15 + $0x128] ss:$28 sps:$4 sm:$0xff]  }
 0x487   :  { %v1082_v33 = vpop.f32.mrb[12].mxu0 }
 0x488   :  { %v1083_v34 = vadd.f32 %v1961_v32, %v1082_v33  ;;  %v2259_v35 = vpop.f32.mrb[13].mxu0  ;;  %v2473_v32 = vld [vmem:[%s3216_s15 + $0x48] ss:$28 sps:$4 sm:$0xff]   ;;  %v2476_v33 = vld [vmem:[%s3216_s15 + $0x50] ss:$28 sps:$4 sm:$0xff]  }
 0x489   :  { %v1085_v36 = vpop.f32.mrb[14].mxu0  ;;  %v2477_v35 = vld [vmem:[%s3216_s15 + $0x80] ss:$28 sps:$4 sm:$0xff]  }
 0x48a   :  { %v1088_v37 = vmax.f32 %v1083_v34, 0.0  ;;  %v2260_v38 = vpop.f32.mrb[15].mxu0  ;;  %v2479_v34 = vld [vmem:[%s3216_s15 + $0x84] ss:$28 sps:$4 sm:$0xff]  }
 0x48b   :  { %v2480_v36 = vld [vmem:[%s3216_s15 + $0x88] ss:$28 sps:$4 sm:$0xff]   ;;  %v2481_v38 = vld [vmem:[%s3216_s15 + $0xb8] ss:$28 sps:$4 sm:$0xff]  }
 0x48c   :  { %v1089_v39 = vpack.c.bf16 %v1088_v37, %v1088_v37  ;;  %v2483_v37 = vld [vmem:[%s3216_s15 + $0xbc] ss:$28 sps:$4 sm:$0xff]  }
 0x48e   :  { %2278 = vmatmul.mubr.bf16.vlgmr.msra.gmra.mrb[16].mxu1 %v1089_v39  ;;  %v2484_v39 = vld [vmem:[%s3216_s15 + $0xc0] ss:$28 sps:$4 sm:$0xff]  }
 0x48f   :  { %1706 = vmatpush1.bf16.msra.mxu1 %v2421_v42  ;;  %1737 = vmatprep.mubr.bf16.mxu1 %v2503_v20  ;;  %v2488_v42 = vld [vmem:[%s3216_s15 + $0xf8] ss:$28 sps:$4 sm:$0xff]  }
 0x490   :  { %1707 = vmatprep.subr.bf16.mxu1 %v2429_v46  ;;  %v2492_v46 = vld [vmem:[%s3216_s15 + $0x130] ss:$28 sps:$4 sm:$0xff]  }
 0x493   :  { %1708 = vmatpush1.bf16.msra.mxu1 %v2427_v47  ;;  %v2495_v47 = vld [vmem:[%s3216_s15 + $0x164] ss:$28 sps:$4 sm:$0xff]  }
 0x494   :  { %1709 = vmatprep.subr.bf16.mxu1 %v2435_v48  ;;  %v2493_v48 = vld [vmem:[%s3216_s15 + $0x160] ss:$28 sps:$4 sm:$0xff]  }
 0x497   :  { %1710 = vmatpush1.bf16.msra.mxu1 %v2433_v49  ;;  %v2496_v49 = vld [vmem:[%s3216_s15 + $0x168] ss:$28 sps:$4 sm:$0xff]  }
 0x498   :  { %1711 = vmatprep.subr.bf16.mxu1 %v2441_v50  ;;  %v2499_v50 = vld [vmem:[%s3216_s15 + $0x19c] ss:$28 sps:$4 sm:$0xff]  }
 0x49b   :  { %1712 = vmatpush1.bf16.msra.mxu1 %v2439_v51  ;;  %v2497_v51 = vld [vmem:[%s3216_s15 + $0x198] ss:$28 sps:$4 sm:$0xff]  }
 0x49c   :  { %1713 = vmatprep.subr.bf16.mxu1 %v2447_v52  ;;  %v2500_v52 = vld [vmem:[%s3216_s15 + $0x1a0] ss:$28 sps:$4 sm:$0xff]  }
 0x49f   :  { %1714 = vmatpush1.bf16.msra.mxu1 %v2445_v53  ;;  %v1382_v53 = vlaneseq }
 0x4a0   :  { %1715 = vmatprep.subr.bf16.mxu1 %v2453_v54 }
 0x4a1   :  { %v1383_v54 = vshrl.u32 %v1382_v53, 7 }
 0x4a3   :  { %1716 = vmatpush1.bf16.msra.mxu1 %v2451_v55  ;;  %v1384_v55 = vsub.s32 0, %v1383_v54 }
 0x4a4   :  { %1717 = vmatprep.subr.bf16.mxu1 %v2459_v56  ;;  %v1392_v56 = vsub.s32 2, %v1383_v54 }
 0x4a7   :  { %1718 = vmatpush1.bf16.msra.mxu1 %v2457_v57  ;;  %v1380_v57 = vld [vmem:[%s3219_s16] sm:$0x7f] }
 0x4a8   :  { %1719 = vmatprep.subr.bf16.mxu1 %v2465_v15 }
 0x4ab   :  { %1720 = vmatpush1.bf16.msra.mxu1 %v2463_v17 }
 0x4ac   :  { %1787 = vmatprep.subr.bf16.mxu1 %v2471_v19 }
 0x561   :  { %v1195_v59 = vpop.f32.mrb[16].mxu1 }
 0x562   :  { %v1196_v60 = vadd.f32 %v1970_v58, %v1195_v59  ;;  %v2279_v61 = vpop.f32.mrb[17].mxu1  ;;  %v1388_v58 = vsub.s32 1, %v1383_v54  ;;  %v1396_v59 = vsub.s32 3, %v1383_v54 }
 0x563   :  { %v1198_v62 = vpop.f32.mrb[18].mxu1  ;;  %v1393_v61 = vrot.slane %v1380_v57, %v1392_v56 }
 0x564   :  { %v1201_v63 = vmax.f32 %v1196_v60, 0.0  ;;  %v2280_v0 = vpop.f32.mrb[19].mxu1  ;;  %v1385_v60 = vrot.slane %v1380_v57, %v1384_v55  ;;  %v1389_v62 = vrot.slane %v1380_v57, %v1388_v58 }
 0x566   :  { %v1202_v2 = vpack.c.bf16 %v1201_v63, %v1201_v63  ;;  %v1397_v63 = vrot.slane %v1380_v57, %v1396_v59 }
 0x568   :  { %2298 = vmatmul.mubr.bf16.vlgmr.msra.gmra.mrb[16].mxu0 %v1202_v2 }
 0x569   :  { %1747 = vmatpush1.bf16.msra.mxu0 %v2424_v1  ;;  %1778 = vmatprep.mubr.bf16.mxu0 %v2503_v20 }
 0x56a   :  { %1748 = vmatprep.subr.bf16.mxu0 %v2432_v3 }
 0x56d   :  { %1749 = vmatpush1.bf16.msra.mxu0 %v2430_v4 }
 0x56e   :  { %1750 = vmatprep.subr.bf16.mxu0 %v2438_v5 }
 0x571   :  { %1751 = vmatpush1.bf16.msra.mxu0 %v2436_v6 }
 0x572   :  { %1752 = vmatprep.subr.bf16.mxu0 %v2444_v7 }
 0x575   :  { %1753 = vmatpush1.bf16.msra.mxu0 %v2442_v8 }
 0x576   :  { %1754 = vmatprep.subr.bf16.mxu0 %v2450_v9 }
 0x579   :  { %1755 = vmatpush1.bf16.msra.mxu0 %v2448_v10 }
 0x57a   :  { %1756 = vmatprep.subr.bf16.mxu0 %v2456_v11  ;;  %v1400_v11 = vsub.s32 4, %v1383_v54 }
 0x57d   :  { %1757 = vmatpush1.bf16.msra.mxu0 %v2454_v12  ;;  %v1408_v12 = vsub.s32 6, %v1383_v54 }
 0x57e   :  { %1758 = vmatprep.subr.bf16.mxu0 %v2462_v13  ;;  %v1404_v13 = vsub.s32 5, %v1383_v54 }
 0x57f   :  { %v1409_v15 = vrot.slane %v1380_v57, %v1408_v12 }
 0x581   :  { %1759 = vmatpush1.bf16.msra.mxu0 %v2460_v14  ;;  %v1401_v14 = vrot.slane %v1380_v57, %v1400_v11 }
 0x582   :  { %1760 = vmatprep.subr.bf16.mxu0 %v2468_v16  ;;  %v1405_v16 = vrot.slane %v1380_v57, %v1404_v13 }
 0x585   :  { %1761 = vmatpush1.bf16.msra.mxu0 %v2466_v18 }
 0x586   :  { %2301 = vmatprep.subr.bf16.mxu0 %v2501_v44 }
 0x63b   :  { %v1308_v22 = vpop.f32.mrb[16].mxu0 }
 0x63c   :  { %v1309_v23 = vadd.f32 %v1979_v21, %v1308_v22  ;;  %v2299_v24 = vpop.f32.mrb[17].mxu0 }
 0x63d   :  { %v1311_v25 = vpop.f32.mrb[18].mxu0 }
 0x63e   :  { %v1314_v26 = vmax.f32 %v1309_v23, 0.0  ;;  %v2300_v27 = vpop.f32.mrb[19].mxu0 }
 0x640   :  { %v1315_v30 = vpack.c.bf16 %v1314_v26, %v1314_v26 }
 0x642   :  { %1738 = vmatmul.mubr.bf16.vlgmr.msra.gmra.mrb[20].mxu1 %v1315_v30  ;;  %1779 = vmatmul.mubr.bf16.vlgmr.msra.gmra.mrb[20].mxu0 %v1315_v30 }
 0x643   :  { %1788 = vmatpush1.bf16.msra.mxu1 %v2469_v28  ;;  %2302 = vmatpush3.bf16.msra.mxu0 %v2472_v29 }
 0x644   :  { %1789 = vmatprep.subr.bf16.mxu1 %v2475_v31  ;;  %2303 = vmatprep.subr.bf16.mxu0 %v2501_v44 }
 0x645   :  { %1819 = vmatprep.mubr.bf16.mxu1 %v2503_v20  ;;  %2317 = vmatprep.mubr.msk.bf16.mxu0 %vm2502_vm0, %v2501_v44 }
 0x647   :  { %1790 = vmatpush1.bf16.msra.mxu1 %v2473_v32  ;;  %2304 = vmatpush3.bf16.msra.mxu0 %v2476_v33 }
 0x648   :  { %1791 = vmatprep.subr.bf16.mxu1 %v2479_v34  ;;  %2305 = vmatprep.subr.bf16.mxu0 %v2501_v44 }
 0x64b   :  { %1792 = vmatpush1.bf16.msra.mxu1 %v2477_v35  ;;  %2306 = vmatpush3.bf16.msra.mxu0 %v2480_v36 }
 0x64c   :  { %1793 = vmatprep.subr.bf16.mxu1 %v2483_v37  ;;  %2307 = vmatprep.subr.bf16.mxu0 %v2501_v44 }
 0x64f   :  { %1794 = vmatpush1.bf16.msra.mxu1 %v2481_v38  ;;  %2308 = vmatpush3.bf16.msra.mxu0 %v2484_v39 }
 0x650   :  { %1795 = vmatprep.subr.bf16.mxu1 %v2487_v40  ;;  %2309 = vmatprep.subr.bf16.mxu0 %v2501_v44 }
 0x653   :  { %1796 = vmatpush1.bf16.msra.mxu1 %v2485_v41  ;;  %2310 = vmatpush3.bf16.msra.mxu0 %v2488_v42 }
 0x654   :  { %1797 = vmatprep.subr.bf16.mxu1 %v2491_v43  ;;  %2311 = vmatprep.subr.bf16.mxu0 %v2501_v44 }
 0x657   :  { %1798 = vmatpush1.bf16.msra.mxu1 %v2489_v45  ;;  %2312 = vmatpush3.bf16.msra.mxu0 %v2492_v46 }
 0x658   :  { %1799 = vmatprep.subr.bf16.mxu1 %v2495_v47  ;;  %2313 = vmatprep.subr.bf16.mxu0 %v2501_v44 }
 0x65b   :  { %1800 = vmatpush1.bf16.msra.mxu1 %v2493_v48  ;;  %2314 = vmatpush3.bf16.msra.mxu0 %v2496_v49 }
 0x65c   :  { %1801 = vmatprep.subr.bf16.mxu1 %v2499_v50  ;;  %2315 = vmatprep.subr.bf16.mxu0 %v2501_v44 }
 0x65f   :  { %1802 = vmatpush1.bf16.msra.mxu1 %v2497_v51  ;;  %2316 = vmatpush3.bf16.msra.mxu0 %v2500_v52 }
 0x662   :  { %1820 = vmatmul.mubr.bf16.vlgmr.msra.gmra.mrb[24].mxu1 %v1315_v30  ;;  %2318 = vmatmul.mubr.bf16.vlgmr.msra.gmra.mrb[24].mxu0 %v1315_v30 }
 0x715   :  { %v1739_v0 = vpop.f32.mrb[20].mxu1  ;;  %v1780_v44 = vpop.f32.mrb[20].mxu0 }
 0x716   :  { %v1740_v1 = vadd.f32 %v1739_v0, %v1385_v60  ;;  %v1781_v2 = vadd.f32 %v1780_v44, %v1393_v61  ;;  %v1741_v3 = vpop.f32.mrb[21].mxu1  ;;  %v1782_v4 = vpop.f32.mrb[21].mxu0 }
 0x717   :  { %v1742_v5 = vadd.f32 %v1741_v3, %v1389_v62  ;;  %v1783_v6 = vadd.f32 %v1782_v4, %v1397_v63  ;;  %v1743_v7 = vpop.f32.mrb[22].mxu1  ;;  %v1784_v8 = vpop.f32.mrb[22].mxu0 }
 0x718   :  { %1868 = vst [vmem:[%s3220_s17] sm:$0xff] %v1740_v1  ;;  %1870 = vst [vmem:[%s3220_s17 + $0x10] sm:$0xff] %v1781_v2  ;;  %v1744_v9 = vpop.f32.mrb[23].mxu1  ;;  %v1785_v10 = vpop.f32.mrb[23].mxu0 }
 0x719   :  { %1869 = vst [vmem:[%s3220_s17 + $0x8] sm:$0xff] %v1742_v5  ;;  %1871 = vst [vmem:[%s3220_s17 + $0x18] sm:$0xff] %v1783_v6 }
 0x735   :  { %v1821_v17 = vpop.f32.mrb[24].mxu1  ;;  %v1862_v18 = vpop.f32.mrb[24].mxu0 }
 0x736   :  { %v1822_v19 = vadd.f32 %v1821_v17, %v1401_v14  ;;  %v1863_v20 = vadd.f32 %v1862_v18, %v1409_v15  ;;  %v1823_v21 = vpop.f32.mrb[25].mxu1  ;;  %v2319_v22 = vpop.f32.mrb[25].mxu0 }
 0x737   :  { %v1824_v23 = vadd.f32 %v1823_v21, %v1405_v16  ;;  %v1825_v24 = vpop.f32.mrb[26].mxu1  ;;  %v1865_v25 = vpop.f32.mrb[26].mxu0 }
 0x738   :  { %1872 = vst [vmem:[%s3220_s17 + $0x20] sm:$0xff] %v1822_v19  ;;  %1874 = vst.msk [vmem:[%s3220_s17 + $0x30] sm:$0xff] %vm472_vm1, %v1863_v20  ;;  %v1826_v26 = vpop.f32.mrb[27].mxu1  ;;  %v2320_v27 = vpop.f32.mrb[27].mxu0 }
 0x739   :  { %1873 = vst [vmem:[%s3220_s17 + $0x28] sm:$0xff] %v1824_v23 }

</bundles_post_ra>
